<compile_context>
chip_gen: v7x
topology: tpu7x:2x2x1
jax: 0.10.0
libtpu: 0.0.40
codegen_flags: <defaults>
</compile_context>

<pallas_src>
import functools

import jax
import jax.numpy as jnp
from jax.experimental import pallas as pl
from jax.experimental.pallas import tpu as pltpu


def _adaptive_threshold_kernel(x_ref, o_ref, *, std_scalar, mean_plus_std, hw):
    """x_ref, o_ref: (N*C, H*W) lane-dense tiles; stats reduce over the lane axis."""
    x = x_ref[...].astype(jnp.float32)                     # (NC, HW)
    mean = jnp.mean(x, axis=-1, keepdims=True)             # (NC, 1)
    if mean_plus_std:
        diff = x - mean
        # torch.Tensor.std default is the unbiased estimator (divide by HW - 1).
        var = jnp.sum(diff * diff, axis=-1, keepdims=True) / float(hw - 1)
        thr = mean + std_scalar * jnp.sqrt(var)
    else:
        thr = mean
    # Match torch's `x * (x > thr)` exactly (multiply-by-mask semantics).
    out = x * (x > thr).astype(jnp.float32)
    o_ref[...] = out.astype(o_ref.dtype)


def adaptive_threshold(x_nchw, std_scalar: float = 0.0, mean_plus_std: bool = True):
    """AdaptiveThreshold.forward for an NCHW tensor via one Pallas kernel."""
    N, C, H, W = x_nchw.shape
    rows, cols = N * C, H * W
    x2d = x_nchw.reshape(rows, cols)        # contiguous reshape -> lane-dense

    kernel = functools.partial(
        _adaptive_threshold_kernel,
        std_scalar=float(std_scalar),
        mean_plus_std=bool(mean_plus_std),
        hw=cols,
    )

    # Single invocation: full arrays live in VMEM (rows*cols*4 bytes each).
    # TODO(synk): for very large N*C / H*W, tile the row axis in multiples of 8
    # with a ("parallel",) grid; unnecessary at these working-set sizes.
    out2d = pl.pallas_call(
        kernel,
        out_shape=jax.ShapeDtypeStruct((rows, cols), x_nchw.dtype),
        in_specs=[pl.BlockSpec(memory_space=pltpu.MemorySpace.VMEM)],
        out_specs=pl.BlockSpec(memory_space=pltpu.MemorySpace.VMEM),
    )(x2d)
    return out2d.reshape(N, C, H, W)


class AdaptiveThreshold:
    """JAX/Pallas analogue of the PyTorch AdaptiveThreshold module."""

    def __init__(self, std_scalar: float = 0.0, mean_plus_std: bool = True):
        self.std_scalar = std_scalar
        self.means_plus_std = mean_plus_std

    def __call__(self, x):
        return adaptive_threshold(x, std_scalar=self.std_scalar,
                                  mean_plus_std=self.means_plus_std)


# ---------------------------------- main ------------------------------------

def _reference(x, std_scalar, mean_plus_std):
    means = jnp.mean(x, axis=(2, 3), keepdims=True)
    stds = jnp.std(x, axis=(2, 3), keepdims=True, ddof=1)   # unbiased, as torch
    thr = means + std_scalar * stds if mean_plus_std else means
    return x * (x > thr)


if __name__ == "__main__":
    key = jax.random.PRNGKey(0)
    N, C, H, W = 2, 4, 16, 16
    x = jax.random.normal(key, (N, C, H, W), jnp.float32)

    configs = [(0.0, True), (0.5, True), (0.25, False)]
    for std_scalar, mean_plus_std in configs:
        mod = AdaptiveThreshold(std_scalar=std_scalar, mean_plus_std=mean_plus_std)
        out = mod(x)
        jax.block_until_ready(out)
        ref = _reference(x, std_scalar, mean_plus_std)
        assert out.shape == x.shape
        assert jnp.allclose(out, ref, atol=1e-5, rtol=1e-5), (std_scalar, mean_plus_std)

    print("KERNEL_OK")
</pallas_src>

<mosaic_0001>
module attributes {stable_mosaic.version = 11 : i64} {
  func.func @_adaptive_threshold_kernel(%arg0: memref<8x256xf32, #tpu.memory_space<vmem>>, %arg1: memref<8x256xf32, #tpu.memory_space<vmem>>) attributes {dimension_semantics = [], scalar_prefetch = 0 : i64, scratch_operands = 0 : i64, tpu.core_type = #tpu.core_type<tc>} {
    %c0 = arith.constant 0 : index
    %c0_0 = arith.constant 0 : index
    %0 = vector.load %arg0[%c0, %c0_0] : memref<8x256xf32, #tpu.memory_space<vmem>>, vector<8x256xf32>
    %cst = arith.constant dense<0.000000e+00> : vector<8xf32>
    %1 = vector.multi_reduction <add>, %0, %cst [1] : vector<8x256xf32> to vector<8xf32>
    %2 = vector.shape_cast %1 : vector<8xf32> to vector<8x1xf32>
    %cst_1 = arith.constant 2.560000e+02 : f32
    %3 = vector.broadcast %cst_1 : f32 to vector<8x1xf32>
    %4 = arith.divf %2, %3 : vector<8x1xf32>
    %5 = vector.broadcast %4 : vector<8x1xf32> to vector<8x256xf32>
    %6 = arith.subf %0, %5 : vector<8x256xf32>
    %7 = arith.mulf %6, %6 : vector<8x256xf32>
    %cst_2 = arith.constant dense<0.000000e+00> : vector<8xf32>
    %8 = vector.multi_reduction <add>, %7, %cst_2 [1] : vector<8x256xf32> to vector<8xf32>
    %9 = vector.shape_cast %8 : vector<8xf32> to vector<8x1xf32>
    %cst_3 = arith.constant 2.550000e+02 : f32
    %10 = vector.broadcast %cst_3 : f32 to vector<8x1xf32>
    %11 = arith.divf %9, %10 : vector<8x1xf32>
    %12 = math.sqrt %11 : vector<8x1xf32>
    %cst_4 = arith.constant 0.000000e+00 : f32
    %13 = vector.broadcast %cst_4 : f32 to vector<8x1xf32>
    %14 = arith.mulf %13, %12 : vector<8x1xf32>
    %15 = arith.addf %4, %14 : vector<8x1xf32>
    %16 = vector.broadcast %15 : vector<8x1xf32> to vector<8x256xf32>
    %17 = arith.cmpf ogt, %0, %16 : vector<8x256xf32>
    %18 = arith.extui %17 : vector<8x256xi1> to vector<8x256xi32>
    %19 = arith.sitofp %18 : vector<8x256xi32> to vector<8x256xf32>
    %20 = arith.mulf %0, %19 : vector<8x256xf32>
    %c0_5 = arith.constant 0 : index
    %c0_6 = arith.constant 0 : index
    %21 = vector.load %arg1[%c0_5, %c0_6] : memref<8x256xf32, #tpu.memory_space<vmem>>, vector<8x256xf32>
    tpu.vector_store %arg1[%c0_5, %c0_6], %20 {strides = array<i32>} : memref<8x256xf32, #tpu.memory_space<vmem>>, vector<8x256xf32>,
    return
  }
}

</mosaic_0001>

<bundles_post_ra>
// kernel: tpu_custom_call.1
= control target key start
LH: loop header
LB: loop body
LE: loop exit
PB: predicated region body
PF: predicated region fallthrough
CT: control target
= control target key end

     0   :  { %6 = vsyncpa [#allocation3], 0  ;;  %s163_s0 = inlined_call_operand.hbm [shape: f32[8,256], index: 0, kind: input, shape index: {}]   ;;  %s164_s1 = inlined_call_operand.hbm [shape: f32[8,256], index: 1, kind: output, shape index: {}]  }
   0x1   :  { %7 = vsyncpa [#allocation4], 0  ;;  %s126_s6 = smov [#allocation2]   ;;  %s78_s10 = scalar_lea.hbm %s163_s0, 256 }
   0x2   :  { %s14_s7 = sshll.u32 %s126_s6, 4  ;;  %p79_p0 = scmp.ne.s32.totalorder %s163_s0, %s78_s10  ;;  %s15_s7 = int_to_ptr.vmem [resolvable:$true] %s14_s7 }
   0x3   :  { %p82_p1 = scmp.lt.u32.totalorder %s78_s10, %s163_s0 }
   0x5   :  { %p84_p2 = pnand %p82_p1, %p79_p0 }
   0x7   :  { %87 = shalt.err (!%p84_p2)
}
   0x8   :  { %s88_s15 = scalar_lea.vmem %s15_s7, 256  ;;  %p93_p4 = scmp.lt.s32.totalorder %s15_s7, %s15_s7 }
   0x9   :  { %p89_p3 = scmp.ne.s32.totalorder %s15_s7, %s88_s15  ;;  %p94_p5 = scmp.lt.s32.totalorder %s88_s15, %s88_s15 }
   0xb   :  { %p95_p6 = por %p94_p5, %p93_p4 }
   0xd   :  { %p96_p7 = pnand %p95_p6, %p89_p3 }
   0xf   :  { %99 = shalt.err (!%p96_p7)
}
  0x10   :  { %17 = dma.hbm_to_vmem [thread:$0]  %s163_s0, 256, %s15_s7, [#allocation3]  }
  0x11   :  { %122 = dma.done.wait [#allocation3], 256  }
  0x12   :  { %123 = vsyncadd [#allocation3], 4294967040  ;;  %v21_v0 = vld [vmem:[#allocation2] sm:$0xff]  ;;  %v22_v1 = vld [vmem:[#allocation2 + $0x8] sm:$0xff]  ;;  %s127_s0 = smov [#allocation5]   ;;  %v128_v19 = vmov 0.0  }
  0x13   :  { %v23_v2 = vadd.f32 %v22_v1, %v21_v0  ;;  %s62_s18 = sshll.u32 %s127_s0, 4  ;;  %s63_s18 = int_to_ptr.vmem [resolvable:$true] %s62_s18 }
  0x14   :  { %s100_s19 = scalar_lea.vmem %s63_s18, 256  ;;  %p105_p9 = scmp.lt.s32.totalorder %s63_s18, %s63_s18 }
  0x15   :  { %24 = vadd.xlane.f32.xlu0 %v23_v2  ;;  %p101_p8 = scmp.ne.s32.totalorder %s63_s18, %s100_s19  ;;  %p106_p10 = scmp.lt.s32.totalorder %s100_s19, %s100_s19 }
  0x17   :  { %p107_p11 = por %p106_p10, %p105_p9 }
  0x19   :  { %p108_p12 = pnand %p107_p11, %p101_p8 }
  0xa2   :  { %v25_v3 = vpop.xlane.xlu0 %24 }
  0xa3   :  { %v27_v4 = vmul.f32 0.00390625, %v25_v3 }
  0xa5   :  { %v28_v5 = vsub.f32 %v21_v0, %v27_v4  ;;  %v29_v6 = vsub.f32 %v22_v1, %v27_v4 }
  0xa7   :  { %v30_v7 = vmul.f32 %v28_v5, %v28_v5  ;;  %v31_v8 = vmul.f32 %v29_v6, %v29_v6 }
  0xa9   :  { %v32_v9 = vadd.f32 %v31_v8, %v30_v7 }
  0xab   :  { %33 = vadd.xlane.f32.xlu0 %v32_v9 }
 0x138   :  { %v34_v10 = vpop.xlane.xlu0 %33 }
 0x139   :  { %v36_v11 = vmul.f32 0.003921569, %v34_v10 }
 0x13b   :  { %76 = vrsqrt.f32 %v36_v11  ;;  %vm39_vm0 = vcmp.eq.f32.partialorder %v36_v11, inf  ;;  %v42_v14 = vand.u32 2147483648, %v36_v11  ;;  %vm41_vm1 = vcmp.eq.f32.partialorder %v36_v11, 0.0 }
 0x145   :  { %v77_v12 = vpop.eup %76 }
 0x146   :  { %v38_v13 = vmul.f32 %v77_v12, %v36_v11 }
 0x148   :  { %v40_v15 = vsel %vm39_vm0, %v36_v11, %v38_v13 }
 0x149   :  { %v43_v16 = vsel %vm41_vm1, %v42_v14, %v40_v15 }
 0x14a   :  { %v44_v17 = vmul.f32 0.0, %v43_v16 }
 0x14c   :  { %v45_v18 = vadd.f32 %v44_v17, %v27_v4 }
 0x14e   :  { %vm46_vm2 = vcmp.gt.f32.partialorder %v21_v0, %v45_v18  ;;  %vm47_vm3 = vcmp.gt.f32.partialorder %v22_v1, %v45_v18 }
 0x14f   :  { %v71_v20 = vsel %vm46_vm2, 1.0, %v128_v19  ;;  %v72_v21 = vsel %vm47_vm3, 1.0, %v128_v19 }
 0x150   :  { %v52_v22 = vmul.f32 %v71_v20, %v21_v0  ;;  %v53_v23 = vmul.f32 %v72_v21, %v22_v1 }
 0x152   :  { %54 = vst [vmem:[#allocation5] sm:$0xff] %v52_v22  ;;  %55 = vst [vmem:[#allocation5 + $0x8] sm:$0xff] %v53_v23 }
 0x153   :  { %111 = shalt.err (!%p108_p12)
}
 0x154   :  { %s112_s22 = scalar_lea.hbm %s164_s1, 256 }
 0x155   :  { %p113_p13 = scmp.ne.s32.totalorder %s164_s1, %s112_s22  ;;  %p116_p0 = scmp.lt.u32.totalorder %s112_s22, %s164_s1 }
 0x157   :  { %p118_p1 = pnand %p116_p0, %p113_p13 }
 0x159   :  { %121 = shalt.err (!%p118_p1)
}
 0x15a   :  { %65 = dma.vmem_to_hbm [thread:$0]  %s63_s18, 256, %s164_s1, [#allocation4]  }
 0x15b   :  { %124 = dma.done.wait [#allocation4], 256  }
 0x15c   :  { %125 = vsyncadd [#allocation4], 4294967040 }
 0x15d   :  { %69 = vsyncpa [#allocation3], 1 }
 0x15e   :  { %70 = vsyncpa [#allocation4], 1 }

</bundles_post_ra>
